<compile_context>
chip_gen: v7x
topology: tpu7x:2x2x1
jax: 0.10.0
libtpu: 0.0.40
codegen_flags: <defaults>
</compile_context>

<pallas_src>
import functools

import jax
import jax.numpy as jnp
from jax import lax
from jax.experimental import pallas as pl
from jax.experimental.pallas import tpu as pltpu

EPS = 1e-12  # torch.nn.functional.normalize default eps


# ------------------------------ Pallas kernel -------------------------------

def fused_embed_kernel(p_ref, cw_ref, cb_ref, fcw_ref, fcb_ref, lw_ref, lb_ref,
                       o_ref, acc_ref, *, inv_hw):
    """Grid step (b, t): conv tile + ReLU + fused avg-pool accumulation.

    At the last spatial tile of batch row b, run the Embedding_Network head:
    fc -> L2-normalize -> Linear -> L2-normalize, write the (1, out_size) row.
    """
    t = pl.program_id(1)

    @pl.when(t == 0)
    def _init():
        acc_ref[...] = jnp.zeros_like(acc_ref)

    # Stand-in backbone conv tile: (tm, C*9)bf16 @ (C*9, OC)bf16 -> f32, +bias, ReLU.
    y = jnp.dot(p_ref[0], cw_ref[...], preferred_element_type=jnp.float32)
    y = jnp.maximum(y + cb_ref[...], 0.0)
    # Fused global average pool: accumulate the spatial sum for this batch row.
    acc_ref[...] += jnp.sum(y, axis=0, keepdims=True)

    @pl.when(t == pl.num_programs(1) - 1)
    def _finalize():
        pooled = acc_ref[...] * inv_hw                                 # (1, OC) f32
        # large_rep = fc(pooled); FEAT zero-padded 1000 -> 1024 (zeros are inert).
        large = jnp.dot(pooled.astype(jnp.bfloat16), fcw_ref[...],
                        preferred_element_type=jnp.float32) + fcb_ref[...]
        # F.normalize(large_rep, dim=1) == x * rsqrt(max(|x|^2, eps^2))
        inv1 = lax.rsqrt(jnp.maximum(
            jnp.sum(large * large, axis=-1, keepdims=True), EPS * EPS))
        large_n = large * inv1
        # proj_rep = Linear(1000, out_size)(large_rep_n)
        proj = jnp.dot(large_n.astype(jnp.bfloat16), lw_ref[...],
                       preferred_element_type=jnp.float32) + lb_ref[...]
        # F.normalize(proj_rep, dim=1)
        inv2 = lax.rsqrt(jnp.maximum(
            jnp.sum(proj * proj, axis=-1, keepdims=True), EPS * EPS))
        o_ref[...] = (proj * inv2).reshape(o_ref.shape).astype(o_ref.dtype)


# ------------------------------- wrappers ------------------------------------

def _im2col_3x3(image):
    """NCHW image -> (B, H*W, C*9) patch rows for a 3x3 / pad=1 conv."""
    B, C, H, W = image.shape
    xp = jnp.pad(image, ((0, 0), (0, 0), (1, 1), (1, 1)))
    patches = jnp.stack(
        [xp[:, :, i:i + H, j:j + W] for i in range(3) for j in range(3)], axis=2)
    # (B, C, 9, H, W) -> (B, H, W, C, 9) -> (B, H*W, C*9); feature index = c*9 + tap
    return patches.transpose(0, 3, 4, 1, 2).reshape(B, H * W, C * 9)


def prepare_params(params):
    """One-time parameter prep: transposes, FEAT zero-pad 1000->1024, bf16 cast."""
    OC, C, KH, KW = params["conv_w"].shape
    feat = params["fc_w"].shape[0]
    out_size = params["lin_w"].shape[0]
    feat_p = ((feat + 127) // 128) * 128          # 1000 -> 1024 (lane alignment)

    conv_wmat = params["conv_w"].reshape(OC, C * KH * KW).T.astype(jnp.bfloat16)
    conv_b = params["conv_b"].reshape(1, OC).astype(jnp.float32)

    fc_wT = jnp.zeros((OC, feat_p), jnp.bfloat16)
    fc_wT = fc_wT.at[:, :feat].set(params["fc_w"].T.astype(jnp.bfloat16))
    fc_b = jnp.zeros((1, feat_p), jnp.float32).at[:, :feat].set(params["fc_b"])

    lin_wT = jnp.zeros((feat_p, out_size), jnp.bfloat16)
    lin_wT = lin_wT.at[:feat, :].set(params["lin_w"].T.astype(jnp.bfloat16))
    lin_b = params["lin_b"].reshape(1, out_size).astype(jnp.float32)

    return dict(conv_wmat=conv_wmat, conv_b=conv_b, fc_wT=fc_wT, fc_b=fc_b,
                lin_wT=lin_wT, lin_b=lin_b)


def embedding_network(image, prep, tile_m=128):
    """Embedding_Network forward: (B, C, H, W) -> (B, out_size), rows unit-norm."""
    B, C, H, W = image.shape
    C9, OC = prep["conv_wmat"].shape
    feat_p = prep["fc_wT"].shape[1]
    out_size = prep["lin_wT"].shape[1]
    HW = H * W

    # im2col layout glue for the stand-in conv backbone; bf16 halves patch DMA.
    # TODO(synk): a production backbone would avoid materializing im2col in HBM
    # (in-kernel shifted accumulation or lax.conv); kept for the small stand-in.
    patches = _im2col_3x3(image).astype(jnp.bfloat16)                 # (B, HW, C9)

    # Spatial M-tile: largest that divides HW up to tile_m; budget against the
    # smaller 64 MiB physical / 32 MiB scoped VMEM of v7x (tile is tiny here).
    tm = tile_m if (tile_m <= HW and HW % tile_m == 0) else HW
    n_tiles = HW // tm

    flops = 2 * B * HW * C9 * OC + 2 * B * (OC * feat_p + feat_p * out_size)
    bytes_accessed = (patches.size * 2
                      + (prep["conv_wmat"].size + prep["fc_wT"].size
                         + prep["lin_wT"].size) * 2
                      + (prep["conv_b"].size + prep["fc_b"].size
                         + prep["lin_b"].size) * 4
                      + B * out_size * 4)

    out3 = pl.pallas_call(
        functools.partial(fused_embed_kernel, inv_hw=1.0 / HW),
        out_shape=jax.ShapeDtypeStruct((B, 1, out_size), jnp.float32),
        grid_spec=pltpu.PrefetchScalarGridSpec(
            num_scalar_prefetch=0,
            grid=(B, n_tiles),
            in_specs=[
                pl.BlockSpec((1, tm, C9), lambda b, t: (b, t, 0)),      # patches
                pl.BlockSpec((C9, OC), lambda b, t: (0, 0)),            # conv W
                pl.BlockSpec((1, OC), lambda b, t: (0, 0)),             # conv b
                pl.BlockSpec((OC, feat_p), lambda b, t: (0, 0)),        # fc W^T
                pl.BlockSpec((1, feat_p), lambda b, t: (0, 0)),         # fc b
                pl.BlockSpec((feat_p, out_size), lambda b, t: (0, 0)),  # lin W^T
                pl.BlockSpec((1, out_size), lambda b, t: (0, 0)),       # lin b
            ],
            out_specs=pl.BlockSpec((1, 1, out_size), lambda b, t: (b, 0, 0)),
            scratch_shapes=[pltpu.VMEM((1, OC), jnp.float32)],          # pooled acc
        ),
        compiler_params=pltpu.CompilerParams(
            dimension_semantics=("parallel", "arbitrary"),
            vmem_limit_bytes=32 * 1024 * 1024,
        ),
        cost_estimate=pl.CostEstimate(
            flops=flops, transcendentals=2 * B, bytes_accessed=bytes_accessed),
    )(patches, prep["conv_wmat"], prep["conv_b"], prep["fc_wT"], prep["fc_b"],
      prep["lin_wT"], prep["lin_b"])

    return out3.reshape(B, out_size)


# --------------------------- pure-JAX reference ------------------------------

def reference_forward(image, params):
    """f32 reference matching the PyTorch module (with the stand-in backbone)."""
    OC = params["conv_w"].shape[0]
    patches = _im2col_3x3(image)                                      # f32
    wmat = params["conv_w"].reshape(OC, -1).T
    conv = jnp.maximum(patches @ wmat + params["conv_b"], 0.0)        # (B, HW, OC)
    pooled = conv.mean(axis=1)                                        # (B, OC)
    large = pooled @ params["fc_w"].T + params["fc_b"]
    large_n = large / jnp.maximum(
        jnp.linalg.norm(large, axis=1, keepdims=True), EPS)
    proj = large_n @ params["lin_w"].T + params["lin_b"]
    return proj / jnp.maximum(
        jnp.linalg.norm(proj, axis=1, keepdims=True), EPS)


# ---------------------------------- main -------------------------------------

if __name__ == "__main__":
    B, C, H, W = 2, 4, 16, 16       # small NCHW image
    OC = 8                          # stand-in conv channels
    FEAT = 1000                     # conv_model output dim (ImageNet head)
    OUT = 128                       # out_size

    key = jax.random.PRNGKey(0)
    k_img, k_cw, k_cb, k_fw, k_fb, k_lw, k_lb = jax.random.split(key, 7)

    image = jax.random.normal(k_img, (B, C, H, W), jnp.float32)
    params = {
        # stand-in conv_net parameters (deterministic)
        "conv_w": 0.1 * jax.random.normal(k_cw, (OC, C, 3, 3), jnp.float32),
        "conv_b": 0.1 * jax.random.normal(k_cb, (OC,), jnp.float32),
        "fc_w":   0.1 * jax.random.normal(k_fw, (FEAT, OC), jnp.float32),
        "fc_b":   0.1 * jax.random.normal(k_fb, (FEAT,), jnp.float32),
        # Embedding_Network.linear = nn.Linear(1000, 128)
        "lin_w":  0.05 * jax.random.normal(k_lw, (OUT, FEAT), jnp.float32),
        "lin_b":  0.05 * jax.random.normal(k_lb, (OUT,), jnp.float32),
    }

    prep = prepare_params(params)          # one-time prep, outside the hot path
    fwd = jax.jit(embedding_network)
    out = jax.block_until_ready(fwd(image, prep))

    assert out.shape == (B, OUT), out.shape
    assert bool(jnp.all(jnp.isfinite(out)))
    norms = jnp.linalg.norm(out, axis=1)
    assert bool(jnp.all(jnp.abs(norms - 1.0) < 1e-4)), norms  # rows unit-norm

    ref = reference_forward(image, params)
    max_err = float(jnp.max(jnp.abs(out - ref)))
    assert max_err < 5e-2, max_err          # bf16 matmul-operand tolerance

    print("KERNEL_OK")
</pallas_src>

<mosaic_0001>
module attributes {stable_mosaic.version = 11 : i64} {
  func.func @fused_embed_kernel(%arg0: i32, %arg1: i32, %arg2: memref<1x128x36xbf16, #tpu.memory_space<vmem>>, %arg3: memref<36x8xbf16, #tpu.memory_space<vmem>>, %arg4: memref<1x8xf32, #tpu.memory_space<vmem>>, %arg5: memref<8x1024xbf16, #tpu.memory_space<vmem>>, %arg6: memref<1x1024xf32, #tpu.memory_space<vmem>>, %arg7: memref<1024x128xbf16, #tpu.memory_space<vmem>>, %arg8: memref<1x128xf32, #tpu.memory_space<vmem>>, %arg9: memref<1x1x128xf32, #tpu.memory_space<vmem>>, %arg10: memref<1x8xf32, #tpu.memory_space<vmem>>) attributes {dimension_semantics = [#tpu.dimension_semantics<parallel>, #tpu.dimension_semantics<arbitrary>], iteration_bounds = array<i64: 2, 2>, scalar_prefetch = 0 : i64, scratch_operands = 1 : i64, tpu.core_type = #tpu.core_type<tc>, window_params = [{transform_indices = @transform_0, window_bounds = array<i64: 1, 128, 36>}, {pipeline_mode = #tpu.pipeline_mode<synchronous>, transform_indices = @transform_1, window_bounds = array<i64: 36, 8>}, {pipeline_mode = #tpu.pipeline_mode<synchronous>, transform_indices = @transform_2, window_bounds = array<i64: 1, 8>}, {pipeline_mode = #tpu.pipeline_mode<synchronous>, transform_indices = @transform_3, window_bounds = array<i64: 8, 1024>}, {pipeline_mode = #tpu.pipeline_mode<synchronous>, transform_indices = @transform_4, window_bounds = array<i64: 1, 1024>}, {pipeline_mode = #tpu.pipeline_mode<synchronous>, transform_indices = @transform_5, window_bounds = array<i64: 1024, 128>}, {pipeline_mode = #tpu.pipeline_mode<synchronous>, transform_indices = @transform_6, window_bounds = array<i64: 1, 128>}, {transform_indices = @transform_7, window_bounds = array<i64: 1, 1, 128>}]} {
    %c0_i32 = arith.constant 0 : i32
    %0 = arith.cmpi eq, %arg1, %c0_i32 : i32
    %1 = arith.extui %0 : i1 to i32
    %c0_i32_0 = arith.constant 0 : i32
    %2 = arith.cmpi ne, %1, %c0_i32_0 : i32
    scf.if %2 {
      %cst_14 = arith.constant 0.000000e+00 : f32
      %20 = vector.broadcast %cst_14 : f32 to vector<1x8xf32>
      %c0_15 = arith.constant 0 : index
      %c0_16 = arith.constant 0 : index
      %21 = vector.load %arg10[%c0_15, %c0_16] : memref<1x8xf32, #tpu.memory_space<vmem>>, vector<1x8xf32>
      tpu.vector_store %arg10[%c0_15, %c0_16], %20 {strides = array<i32>} : memref<1x8xf32, #tpu.memory_space<vmem>>, vector<1x8xf32>,
    } else {
    }
    %c0 = arith.constant 0 : index
    %c0_1 = arith.constant 0 : index
    %c0_2 = arith.constant 0 : index
    %3 = vector.load %arg2[%c0, %c0_1, %c0_2] : memref<1x128x36xbf16, #tpu.memory_space<vmem>>, vector<1x128x36xbf16>
    %4 = vector.shape_cast %3 : vector<1x128x36xbf16> to vector<128x36xbf16>
    %c0_3 = arith.constant 0 : index
    %c0_4 = arith.constant 0 : index
    %5 = vector.load %arg3[%c0_3, %c0_4] : memref<36x8xbf16, #tpu.memory_space<vmem>>, vector<36x8xbf16>
    %cst = arith.constant dense<0.000000e+00> : vector<128x8xf32>
    %6 = tpu.matmul %4, %5, %cst {dimension_numbers = #tpu.dot_dimension_numbers<[1], [0], [0], [1], [0, 0, 1, 1], [], []>} : vector<128x36xbf16>, vector<36x8xbf16>, vector<128x8xf32> -> vector<128x8xf32>
    %c0_5 = arith.constant 0 : index
    %c0_6 = arith.constant 0 : index
    %7 = vector.load %arg4[%c0_5, %c0_6] : memref<1x8xf32, #tpu.memory_space<vmem>>, vector<1x8xf32>
    %8 = vector.broadcast %7 : vector<1x8xf32> to vector<128x8xf32>
    %9 = arith.addf %6, %8 : vector<128x8xf32>
    %cst_7 = arith.constant 0.000000e+00 : f32
    %10 = vector.broadcast %cst_7 : f32 to vector<128x8xf32>
    %11 = arith.maximumf %9, %10 : vector<128x8xf32>
    %c0_8 = arith.constant 0 : index
    %c0_9 = arith.constant 0 : index
    %12 = vector.load %arg10[%c0_8, %c0_9] : memref<1x8xf32, #tpu.memory_space<vmem>>, vector<1x8xf32>
    %cst_10 = arith.constant dense<0.000000e+00> : vector<8xf32>
    %13 = vector.multi_reduction <add>, %11, %cst_10 [0] : vector<128x8xf32> to vector<8xf32>
    %14 = vector.shape_cast %13 : vector<8xf32> to vector<1x8xf32>
    %15 = arith.addf %12, %14 : vector<1x8xf32>
    %c0_11 = arith.constant 0 : index
    %c0_12 = arith.constant 0 : index
    %16 = vector.load %arg10[%c0_11, %c0_12] : memref<1x8xf32, #tpu.memory_space<vmem>>, vector<1x8xf32>
    tpu.vector_store %arg10[%c0_11, %c0_12], %15 {strides = array<i32>} : memref<1x8xf32, #tpu.memory_space<vmem>>, vector<1x8xf32>,
    %c1_i32 = arith.constant 1 : i32
    %17 = arith.cmpi eq, %arg1, %c1_i32 : i32
    %18 = arith.extui %17 : i1 to i32
    %c0_i32_13 = arith.constant 0 : i32
    %19 = arith.cmpi ne, %18, %c0_i32_13 : i32
    scf.if %19 {
      %c0_14 = arith.constant 0 : index
      %c0_15 = arith.constant 0 : index
      %20 = vector.load %arg10[%c0_14, %c0_15] : memref<1x8xf32, #tpu.memory_space<vmem>>, vector<1x8xf32>
      %cst_16 = arith.constant 3.906250e-03 : f32
      %21 = vector.broadcast %cst_16 : f32 to vector<1x8xf32>
      %22 = arith.mulf %20, %21 : vector<1x8xf32>
      %23 = arith.truncf %22 : vector<1x8xf32> to vector<1x8xbf16>
      %c0_17 = arith.constant 0 : index
      %c0_18 = arith.constant 0 : index
      %24 = vector.load %arg5[%c0_17, %c0_18] : memref<8x1024xbf16, #tpu.memory_space<vmem>>, vector<8x1024xbf16>
      %cst_19 = arith.constant dense<0.000000e+00> : vector<1x1024xf32>
      %25 = tpu.matmul %23, %24, %cst_19 {dimension_numbers = #tpu.dot_dimension_numbers<[1], [0], [0], [1], [0, 0, 1, 1], [], []>} : vector<1x8xbf16>, vector<8x1024xbf16>, vector<1x1024xf32> -> vector<1x1024xf32>
      %c0_20 = arith.constant 0 : index
      %c0_21 = arith.constant 0 : index
      %26 = vector.load %arg6[%c0_20, %c0_21] : memref<1x1024xf32, #tpu.memory_space<vmem>>, vector<1x1024xf32>
      %27 = arith.addf %25, %26 : vector<1x1024xf32>
      %28 = arith.mulf %27, %27 : vector<1x1024xf32>
      %cst_22 = arith.constant dense<0.000000e+00> : vector<1xf32>
      %29 = vector.multi_reduction <add>, %28, %cst_22 [1] : vector<1x1024xf32> to vector<1xf32>
      %30 = vector.shape_cast %29 : vector<1xf32> to vector<1x1xf32>
      %cst_23 = arith.constant 1.000000e-24 : f32
      %31 = vector.broadcast %cst_23 : f32 to vector<1x1xf32>
      %32 = arith.maximumf %30, %31 : vector<1x1xf32>
      %33 = math.rsqrt %32 : vector<1x1xf32>
      %34 = vector.broadcast %33 : vector<1x1xf32> to vector<1x1024xf32>
      %35 = arith.mulf %27, %34 : vector<1x1024xf32>
      %36 = arith.truncf %35 : vector<1x1024xf32> to vector<1x1024xbf16>
      %c0_24 = arith.constant 0 : index
      %c0_25 = arith.constant 0 : index
      %37 = vector.load %arg7[%c0_24, %c0_25] : memref<1024x128xbf16, #tpu.memory_space<vmem>>, vector<1024x128xbf16>
      %cst_26 = arith.constant dense<0.000000e+00> : vector<1x128xf32>
      %38 = tpu.matmul %36, %37, %cst_26 {dimension_numbers = #tpu.dot_dimension_numbers<[1], [0], [0], [1], [0, 0, 1, 1], [], []>} : vector<1x1024xbf16>, vector<1024x128xbf16>, vector<1x128xf32> -> vector<1x128xf32>
      %c0_27 = arith.constant 0 : index
      %c0_28 = arith.constant 0 : index
      %39 = vector.load %arg8[%c0_27, %c0_28] : memref<1x128xf32, #tpu.memory_space<vmem>>, vector<1x128xf32>
      %40 = arith.addf %38, %39 : vector<1x128xf32>
      %41 = arith.mulf %40, %40 : vector<1x128xf32>
      %cst_29 = arith.constant dense<0.000000e+00> : vector<1xf32>
      %42 = vector.multi_reduction <add>, %41, %cst_29 [1] : vector<1x128xf32> to vector<1xf32>
      %43 = vector.shape_cast %42 : vector<1xf32> to vector<1x1xf32>
      %cst_30 = arith.constant 1.000000e-24 : f32
      %44 = vector.broadcast %cst_30 : f32 to vector<1x1xf32>
      %45 = arith.maximumf %43, %44 : vector<1x1xf32>
      %46 = math.rsqrt %45 : vector<1x1xf32>
      %47 = vector.broadcast %46 : vector<1x1xf32> to vector<1x128xf32>
      %48 = arith.mulf %40, %47 : vector<1x128xf32>
      %49 = vector.shape_cast %48 : vector<1x128xf32> to vector<1x1x128xf32>
      %c0_31 = arith.constant 0 : index
      %c0_32 = arith.constant 0 : index
      %c0_33 = arith.constant 0 : index
      %50 = vector.load %arg9[%c0_31, %c0_32, %c0_33] : memref<1x1x128xf32, #tpu.memory_space<vmem>>, vector<1x1x128xf32>
      tpu.vector_store %arg9[%c0_31, %c0_32, %c0_33], %49 {strides = array<i32>} : memref<1x1x128xf32, #tpu.memory_space<vmem>>, vector<1x1x128xf32>,
    } else {
    }
    return
  }
  func.func @transform_0(%arg0: i32, %arg1: i32) -> (i32, i32, i32) {
    %c0_i32 = arith.constant 0 : i32
    %c0_i32_0 = arith.constant 0 : i32
    return %arg0, %arg1, %c0_i32 : i32, i32, i32
  }
  func.func @transform_1(%arg0: i32, %arg1: i32) -> (i32, i32) {
    %c0_i32 = arith.constant 0 : i32
    %c0_i32_0 = arith.constant 0 : i32
    %c0_i32_1 = arith.constant 0 : i32
    return %c0_i32, %c0_i32_0 : i32, i32
  }
  func.func @transform_2(%arg0: i32, %arg1: i32) -> (i32, i32) {
    %c0_i32 = arith.constant 0 : i32
    %c0_i32_0 = arith.constant 0 : i32
    %c0_i32_1 = arith.constant 0 : i32
    return %c0_i32, %c0_i32_0 : i32, i32
  }
  func.func @transform_3(%arg0: i32, %arg1: i32) -> (i32, i32) {
    %c0_i32 = arith.constant 0 : i32
    %c0_i32_0 = arith.constant 0 : i32
    %c0_i32_1 = arith.constant 0 : i32
    return %c0_i32, %c0_i32_0 : i32, i32
  }
  func.func @transform_4(%arg0: i32, %arg1: i32) -> (i32, i32) {
    %c0_i32 = arith.constant 0 : i32
    %c0_i32_0 = arith.constant 0 : i32
    %c0_i32_1 = arith.constant 0 : i32
    return %c0_i32, %c0_i32_0 : i32, i32
  }
  func.func @transform_5(%arg0: i32, %arg1: i32) -> (i32, i32) {
    %c0_i32 = arith.constant 0 : i32
    %c0_i32_0 = arith.constant 0 : i32
    %c0_i32_1 = arith.constant 0 : i32
    return %c0_i32, %c0_i32_0 : i32, i32
  }
  func.func @transform_6(%arg0: i32, %arg1: i32) -> (i32, i32) {
    %c0_i32 = arith.constant 0 : i32
    %c0_i32_0 = arith.constant 0 : i32
    %c0_i32_1 = arith.constant 0 : i32
    return %c0_i32, %c0_i32_0 : i32, i32
  }
  func.func @transform_7(%arg0: i32, %arg1: i32) -> (i32, i32, i32) {
    %c0_i32 = arith.constant 0 : i32
    %c0_i32_0 = arith.constant 0 : i32
    %c0_i32_1 = arith.constant 0 : i32
    return %arg0, %c0_i32, %c0_i32_0 : i32, i32, i32
  }
}

</mosaic_0001>

<bundles_post_ra>
// kernel: embedding_network.1
= control target key start
LH: loop header
LB: loop body
LE: loop exit
PB: predicated region body
PF: predicated region fallthrough
CT: control target
= control target key end

     0   :  { %12 = vsyncpa [#allocation4], 0  ;;  %s2671_s0 = inlined_call_operand.vmem [shape: bf16[2,256,36], index: 0, kind: input, shape index: {}]   ;;  %s2672_s1 = inlined_call_operand.vmem [shape: bf16[36,8], index: 1, kind: input, shape index: {}]   ;;  %s2673_s2 = inlined_call_operand.vmem [shape: f32[1,8], index: 2, kind: input, shape index: {}]   ;;  %s2674_s3 = inlined_call_operand.vmem [shape: bf16[8,1024], index: 3, kind: input, shape index: {}]   ;;  %s2675_s4 = inlined_call_operand.vmem [shape: f32[1,1024], index: 4, kind: input, shape index: {}]   ;;  %s2676_s5 = inlined_call_operand.vmem [shape: bf16[1024,128], index: 5, kind: input, shape index: {}]   ;;  %s2677_s6 = inlined_call_operand.vmem [shape: f32[1,128], index: 6, kind: input, shape index: {}]   ;;  %s2678_s7 = inlined_call_operand.hbm [shape: f32[2,1,128], index: 7, kind: output, shape index: {}]  }
   0x1   :  { %14 = vsyncpa [#allocation4 + $0x1], 0  ;;  %s2194_s24 = smov 0   ;;  %s2196_s25 = smov 0  }
   0x2   :  { %s2198_s26 = smov 0   ;;  %s2200_s27 = smov 0  }
   0x3   :  { %s2202_s28 = smov 0   ;;  %s2204_s29 = smov 0  }
   0x4   :  { %s2206_s30 = smov 0   ;;  %s2208_s8 = smov 0  }
   0x5 LB: > { %s1653_s9 = sadd.s32 4294967295, %s2149_s8   ;;  %s1654_s10 = sadd.s32 4294967294, %s2149_s8   ;;  %s2149_s8 = sphi %s2208_s8, %s20_s8   ;;  %s2145_s30 = sphi %s2206_s30, %s2694_s30   ;;  %s2141_s29 = sphi %s2204_s29, %s2693_s29   ;;  %s2137_s28 = sphi %s2202_s28, %s2692_s28   ;;  %s2133_s27 = sphi %s2200_s27, %s2691_s27   ;;  %s2129_s26 = sphi %s2198_s26, %s2690_s26   ;;  %s2125_s25 = sphi %s2196_s25, %s2689_s25   ;;  %s2121_s24 = sphi %s2194_s24, %s2688_s24  }
   0x6   : > { %s29_s11 = sadd.s32 1, %s2141_s29  ;;  %s32_s12 = sadd.s32 1, %s2145_s30 }
   0x7   : > { %p30_p0 = scmp.ge.s32.totalorder %s29_s11, 2  ;;  %p203_p1 = scmp.ne.s32.totalorder %s2129_s26, %s2125_s25 }
   0x8   : > { %p204_p2 = scmp.eq.s32.totalorder %s1653_s9, 3  ;;  %p209_p4 = scmp.ne.s32.totalorder %s2125_s25, %s2121_s24 }
   0x9   : > { %s2696_s11 = smov (%p30_p0, %s29_s11), 0  ;;  %s2698_s12 = smov (!%p30_p0, %s32_s12), %s2145_s30 }
   0xa   : > { %2681 = sst [smem:[#allocation6_spill]] %s2696_s11  ;;  %p2243_p3 = por %p204_p2, %p203_p1 }
   0xb   : > { %p34_p5 = scmp.ge.s32.totalorder %s2698_s12, 2  ;;  %p210_p6 = scmp.eq.s32.totalorder %s1654_s10, 3 }
   0xc   : > { %p1657_p7 = scmp.ge.s32.totalorder %s2149_s8, 1  ;;  %p259_p8 = scmp.lt.s32.totalorder %s2149_s8, 5 }
   0xd   : > { %s2700_s12 = smov (%p34_p5, %s2698_s12), 0  ;;  %p2253_p9 = por %p210_p6, %p209_p4 }
   0xe   : > { %2683 = sst [smem:[#allocation7_spill]] %s2700_s12  ;;  %p260_p10 = pnand %p1657_p7, %p259_p8 }
   0xf   : > { %s190_s15 = ssub.s32 %s2145_s30, %s2700_s12  ;;  %s193_s16 = sadd.s32 1, %s2129_s26 }
  0x10   : > { %p191_p11 = scmp.eq.s32.totalorder %s190_s15, 0  ;;  %263 = sbr.rel (%p260_p10) target bundleno = 1150 (0x47e), region = 48 }
  0x11   : > { %s2680_s18 = sand.u32 (!%p260_p10), 1, %s2125_s25   ;;  %s1658_s19 = sshll.u32 (!%p260_p10), %s2133_s27, 4 }
  0x12   : > { %s2261_s17 = scalar_select %p191_p11, %s2129_s26, %s193_s16  }
  0x13   : > { %p295_p12 = scmp.lt.s32.totalorder (!%p260_p10), %s2137_s28, 1  ;;  %p297_p13 = scmp.lt.s32.totalorder (!%p260_p10), %s1658_s19, 31 }
  0x14   : > { %s2274_s16 = scalar_lea.vmem (!%p260_p10), [#allocation3], %s2680_s18  ;;  %p1661_p0 = scmp.ne.s32.totalorder (!%p260_p10), %s2133_s27, 0 }
  0x17   : > { %s296_s20 = scalar_select %p295_p12, %s2137_s28, 1 }
  0x18   : > { %s2702_s19 = smov (!%p297_p13, %s1658_s19), 31  ;;  %308 = sbr.rel (%p1661_p0) target bundleno = 31 (0x1f), region = 52 }
  0x19   : > { %s1659_s21 = sshll.u32 %s296_s20, 5  ;;  %vm309_vm0 = vcmask (!%p1661_p0), 57344   ;;  %v2151_v0 = vmov (!%p1661_p0), 0.0  }
  0x1a   : > { %s300_s22 = sadd.s32 %s1659_s21, %s2702_s19  ;;  %310 = vst.msk [vmem:[#allocation2] sm:$0x1] (!%p1661_p0), %vm309_vm0, %v2151_v0 }
  0x1b   : > { %s1660_s23 = sshll.u32 %s300_s22, 2 }
  0x1c   : > { %s2270_s15 = scalar_lea.vmem %s2671_s0, %s1660_s23 }
  0x1f PF: > { %v1968_v1 = vld [vmem:[%s2672_s1] sm:$0xff]   ;;  %v1969_v2 = vld [vmem:[%s2672_s1 + $0x8] sm:$0xff]   ;;  %vm394_vm1 = vcmask 293888   ;;  %v1970_v3 = vld [vmem:[%s2672_s1 + $0x10] ss:$0 sps:$4 sm:$0x33]  }
  0x20   : > { %1865 = vmatprep.subr.bf16.mxu0 %v1968_v1  ;;  %v1971_v4 = vld [vmem:[%s2270_s15] sm:$0xff]   ;;  %1887 = vmatprep.subr.bf16.mxu1 %v1968_v1  ;;  %vm419_vm2 = vcmask 1041408   ;;  %v1972_v7 = vld [vmem:[%s2270_s15 + $0x8] sm:$0xff]   ;;  %v1973_v9 = vld [vmem:[%s2270_s15 + $0x10] sm:$0xff]   ;;  %vm537_vm3 = vcmask 64512   ;;  %vm576_vm4 = vcmask 57344  }
  0x21   : > { %1866 = vmatpush3.bf16.msra.mxu0 %v1968_v1  ;;  %1890 = vmatpush3.bf16.msra.mxu1 %v1968_v1  ;;  %v1975_v5 = vld [vmem:[%s2270_s15 + $0x20] sm:$0xff]   ;;  %v421_v6 = vsel %vm419_vm2, %v1970_v3, 0  ;;  %v1976_v8 = vld [vmem:[%s2270_s15 + $0x28] sm:$0xff]   ;;  %v1977_v10 = vld [vmem:[%s2270_s15 + $0x30] sm:$0xff]   ;;  %p1682_p1 = scmp.ne.s32.totalorder %s2133_s27, 1 }
  0x22   : > { %1867 = vmatprep.subr.bf16.mxu0 %v1969_v2  ;;  %1871 = vmatprep.mubr.msk.bf16.mxu0 %vm394_vm1, %v1971_v4  ;;  %v1974_v11 = vld [vmem:[%s2270_s15 + $0x18] sm:$0xff]   ;;  %v2305_v13 = vld [vmem:[%s2673_s2] ss:$0 sm:$0xff]  ;;  %vm654_vm5 = vcmask (!%p1682_p1), 1043456   ;;  %vm851_vm6 = vcmask (!%p1682_p1), 1040384  }
  0x23   : > { %1888 = vmatprep.subr.bf16.mxu1 %v1969_v2  ;;  %1879 = vmatprep.mubr.msk.bf16.mxu1 %vm394_vm1, %v1975_v5  ;;  %v1978_v12 = vld [vmem:[%s2270_s15 + $0x38] sm:$0xff]  }
  0x25   : > { %1868 = vmatpush3.bf16.msra.mxu0 %v1969_v2  ;;  %1891 = vmatpush3.bf16.msra.mxu1 %v1969_v2 }
  0x26   : > { %1893 = vmatprep.subr.msk.bf16.mxu0 %vm419_vm2, %v1970_v3  ;;  %1894 = vmatprep.subr.msk.bf16.mxu1 %vm419_vm2, %v1970_v3 }
  0x29   : > { %1870 = vmatpush3.bf16.msra.mxu0 %v421_v6  ;;  %1892 = vmatpush3.bf16.msra.mxu1 %v421_v6 }
  0x2c   : > { %1872 = vmatmul.mubr.msk.bf16.vlgmr.msra.gmra.mrb[0].mxu0 %vm394_vm1, %v1972_v7  ;;  %1880 = vmatmul.mubr.msk.bf16.vlgmr.msra.gmra.mrb[0].mxu1 %vm394_vm1, %v1976_v8 }
  0x2d   : > { %1875 = vmatprep.mubr.msk.bf16.mxu0 %vm394_vm1, %v1973_v9  ;;  %1883 = vmatprep.mubr.msk.bf16.mxu1 %vm394_vm1, %v1977_v10 }
  0x34   : > { %1876 = vmatmul.mubr.msk.bf16.gmra.mrb[4].mxu0 %vm394_vm1, %v1974_v11  ;;  %1884 = vmatmul.mubr.msk.bf16.gmra.mrb[4].mxu1 %vm394_vm1, %v1978_v12 }
  0xff   : > { %v1873_v14 = vpop.f32.mrb[0].mxu0  ;;  %v1881_v15 = vpop.f32.mrb[0].mxu1 }
 0x100   : > { %v457_v16 = vpop.f32.mrb[1].mxu0  ;;  %v489_v17 = vpop.f32.mrb[1].mxu1  ;;  %v466_v18 = vadd.f32 %v1873_v14, %v2305_v13  ;;  %v498_v61 = vadd.f32 %v1881_v15, %v2305_v13 }
 0x101   : > { %v458_v19 = vadd.f32 %v2305_v13, %v457_v16  ;;  %v1874_v20 = vpop.f32.mrb[2].mxu0  ;;  %v1882_v21 = vpop.f32.mrb[2].mxu1  ;;  %v490_v44 = vadd.f32 %v2305_v13, %v489_v17 }
 0x102   : > { %v460_v22 = vpop.f32.mrb[3].mxu0  ;;  %v492_v23 = vpop.f32.mrb[3].mxu1  ;;  %v469_v25 = vadd.f32 %v1874_v20, %v2305_v13  ;;  %v522_v27 = vmax.f32 %v466_v18, 0.0  ;;  %v501_v63 = vadd.f32 %v1882_v21, %v2305_v13  ;;  %v530_v5 = vmax.f32 %v498_v61, 0.0  ;;  %v1991_v61 = vld [vmem:[%s2676_s5 + $0x48] sm:$0xff] (!%p1682_p1)  }
 0x103   : > { %v520_v24 = vmax.f32 %v458_v19, 0.0  ;;  %v461_v26 = vadd.f32 %v2305_v13, %v460_v22  ;;  %v528_v57 = vmax.f32 %v490_v44, 0.0  ;;  %v493_v58 = vadd.f32 %v2305_v13, %v492_v23 }
 0x104   : > { %v523_v30 = vmax.f32 %v469_v25, 0.0  ;;  %v541_v37 = vsel %vm537_vm3, %v522_v27, 0.0  ;;  %v531_v7 = vmax.f32 %v501_v63, 0.0  ;;  %v557_v12 = vsel %vm537_vm3, %v530_v5, 0.0  ;;  %v1993_v63 = vld [vmem:[%s2676_s5 + $0x8] sm:$0xff] (!%p1682_p1)   ;;  %v1999_v5 = vld [vmem:[%s2676_s5 + $0x58] sm:$0xff] (!%p1682_p1)  }
 0x105   : > { %v521_v28 = vmax.f32 %v461_v26, 0.0  ;;  %v538_v29 = vsel %vm537_vm3, %v520_v24, 0.0  ;;  %v553_v1 = vsel %vm537_vm3, %v528_v57, 0.0  ;;  %v529_v2 = vmax.f32 %v493_v58, 0.0  ;;  %v1987_v57 = vld [vmem:[%s2676_s5 + $0x40] sm:$0xff] (!%p1682_p1)  }
 0x106   : > { %v543_v46 = vsel %vm537_vm3, %v523_v30, 0.0  ;;  %v559_v16 = vsel %vm537_vm3, %v531_v7, 0.0  ;;  %v1988_v58 = vld [vmem:[%s2676_s5 + $0xc0] sm:$0xff] (!%p1682_p1)   ;;  %v2001_v7 = vld [vmem:[%s2676_s5 + $0x18] sm:$0xff] (!%p1682_p1)  }
 0x107   : > { %v539_v31 = vsel %vm537_vm3, %v521_v28, 0.0  ;;  %v1877_v32 = vpop.f32.mrb[4].mxu0  ;;  %v1885_v33 = vpop.f32.mrb[4].mxu1  ;;  %v555_v8 = vsel %vm537_vm3, %v529_v2, 0.0  ;;  %v1996_v2 = vld [vmem:[%s2676_s5 + $0xd0] sm:$0xff] (!%p1682_p1)  }
 0x108   : > { %v540_v34 = vadd.f32 %v539_v31, %v538_v29  ;;  %v473_v35 = vpop.f32.mrb[5].mxu0  ;;  %v505_v36 = vpop.f32.mrb[5].mxu1  ;;  %v482_v38 = vadd.f32 %v1877_v32, %v2305_v13  ;;  %v514_v14 = vadd.f32 %v1885_v33, %v2305_v13 }
 0x109   : > { %v474_v39 = vadd.f32 %v2305_v13, %v473_v35  ;;  %v1878_v40 = vpop.f32.mrb[6].mxu0  ;;  %v1886_v41 = vpop.f32.mrb[6].mxu1  ;;  %v506_v3 = vadd.f32 %v2305_v13, %v505_v36 }
 0x10a   : > { %v542_v42 = vadd.f32 %v541_v37, %v540_v34  ;;  %v476_v43 = vpop.f32.mrb[7].mxu0  ;;  %v508_v45 = vpop.f32.mrb[7].mxu1  ;;  %v485_v48 = vadd.f32 %v1878_v40, %v2305_v13  ;;  %v526_v51 = vmax.f32 %v482_v38, 0.0  ;;  %v517_v18 = vadd.f32 %v1886_v41, %v2305_v13  ;;  %v585_v37 = vld [vmem:[%s2674_s3] sm:$0xff] (!%p1682_p1)  ;;  %v586_v38 = vld [vmem:[%s2674_s3 + $0x8] sm:$0xff] (!%p1682_p1) }
 0x10b   : > { %v524_v47 = vmax.f32 %v474_v39, 0.0  ;;  %v477_v49 = vadd.f32 %v2305_v13, %v476_v43  ;;  %v532_v9 = vmax.f32 %v506_v3, 0.0  ;;  %v509_v10 = vadd.f32 %v2305_v13, %v508_v45  ;;  %v536_v13 = vld [vmem:[#allocation2] sm:$0x1]  ;;  %v587_v45 = vld [vmem:[%s2674_s3 + $0x10] sm:$0xff] (!%p1682_p1) }
 0x10c   : > { %v544_v50 = vadd.f32 %v543_v46, %v542_v42  ;;  %v527_v55 = vmax.f32 %v485_v48, 0.0  ;;  %v549_v60 = vsel %vm537_vm3, %v526_v51, 0.0  ;;  %v534_v21 = vmax.f32 %v514_v14, 0.0  ;;  %v588_v46 = vld [vmem:[%s2674_s3 + $0x18] sm:$0xff] (!%p1682_p1)  ;;  %v1997_v3 = vld [vmem:[%s2676_s5 + $0x10] sm:$0xff] (!%p1682_p1)   ;;  %v589_v14 = vld [vmem:[%s2675_s4] sm:$0xff] (!%p1682_p1) }
 0x10d   : > { %v545_v52 = vsel %vm537_vm3, %v524_v47, 0.0  ;;  %v525_v53 = vmax.f32 %v477_v49, 0.0  ;;  %v561_v17 = vsel %vm537_vm3, %v532_v9, 0.0  ;;  %v533_v19 = vmax.f32 %v509_v10, 0.0 }
 0x10e   : > { %v546_v54 = vadd.f32 %v545_v52, %v544_v50  ;;  %v551_v0 = vsel %vm537_vm3, %v527_v55, 0.0  ;;  %v535_v23 = vmax.f32 %v517_v18, 0.0  ;;  %v565_v26 = vsel %vm537_vm3, %v534_v21, 0.0 }
 0x10f   : > { %v547_v56 = vsel %vm537_vm3, %v525_v53, 0.0  ;;  %v563_v24 = vsel %vm537_vm3, %v533_v19, 0.0  ;;  %v1684_v40 = vcombine.high (!%p1682_p1), %v585_v37, %v585_v37  ;;  %v1683_v41 = vcombine.low (!%p1682_p1), %v585_v37, %v585_v37 }
 0x110   : > { %v548_v59 = vadd.f32 %v547_v56, %v546_v54  ;;  %v567_v28 = vsel %vm537_vm3, %v535_v23, 0.0  ;;  %v1686_v42 = vcombine.high (!%p1682_p1), %v586_v38, %v586_v38  ;;  %v2152_v43 = vmov (!%p1682_p1), 0  }
 0x111   : > { %711 = vmatprep.mubr.bf16.mxu0 (!%p1682_p1), %v2152_v43  ;;  %v1685_v44 = vcombine.low (!%p1682_p1), %v586_v38, %v586_v38  ;;  %v1688_v48 = vcombine.high (!%p1682_p1), %v587_v45, %v587_v45  ;;  %752 = vmatprep.mubr.bf16.mxu1 (!%p1682_p1), %v2152_v43  ;;  %v1687_v49 = vcombine.low (!%p1682_p1), %v587_v45, %v587_v45  ;;  %v656_v51 = vsel (!%p1682_p1), %vm654_vm5, %v1683_v41, 0 }
 0x112   : > { %v550_v62 = vadd.f32 %v549_v60, %v548_v59  ;;  %v1690_v50 = vcombine.high (!%p1682_p1), %v588_v46, %v588_v46  ;;  %1691 = vmatprep.subr.msk.bf16.mxu0 (!%p1682_p1), %vm654_vm5, %v1684_v40  ;;  %1693 = vmatprep.subr.msk.bf16.mxu1 (!%p1682_p1), %vm654_vm5, %v1686_v42  ;;  %v1689_v53 = vcombine.low (!%p1682_p1), %v588_v46, %v588_v46  ;;  %v1989_v59 = vld [vmem:[%s2676_s5] sm:$0xff] (!%p1682_p1)   ;;  %v611_v9 = vlaneseq (!%p1682_p1) }
 0x113   : > { %v662_v52 = vsel (!%p1682_p1), %vm654_vm5, %v1685_v44, 0  ;;  %680 = vmatpush1.bf16.msra.mxu0 (!%p1682_p1), %v656_v51  ;;  %v668_v55 = vsel (!%p1682_p1), %vm654_vm5, %v1687_v49, 0  ;;  %v1990_v60 = vld [vmem:[%s2676_s5 + $0x80] sm:$0xff] (!%p1682_p1)  }
 0x114   : > { %v552_v4 = vadd.f32 %v551_v0, %v550_v62  ;;  %721 = vmatpush1.bf16.msra.mxu1 (!%p1682_p1), %v662_v52  ;;  %1695 = vmatprep.subr.msk.bf16.mxu0 (!%p1682_p1), %vm654_vm5, %v1688_v48  ;;  %v674_v56 = vsel (!%p1682_p1), %vm654_vm5, %v1689_v53, 0  ;;  %v1992_v62 = vld [vmem:[%s2676_s5 + $0xc8] sm:$0xff] (!%p1682_p1)   ;;  %v612_v10 = vshrl.u32 (!%p1682_p1), %v611_v9, 7 }
 0x115   : > { %1697 = vmatprep.subr.msk.bf16.mxu1 (!%p1682_p1), %vm654_vm5, %v1690_v50  ;;  %v1994_v0 = vld [vmem:[%s2676_s5 + $0x88] sm:$0xff] (!%p1682_p1)  }
 0x116   : > { %v554_v6 = vadd.f32 %v553_v1, %v552_v4  ;;  %v1995_v1 = vld [vmem:[%s2676_s5 + $0x50] sm:$0xff] (!%p1682_p1)   ;;  %v641_v37 = vsub.s32 (!%p1682_p1), 7, %v612_v10 }
 0x117   : > { %v1998_v4 = vld [vmem:[%s2676_s5 + $0x90] sm:$0xff] (!%p1682_p1)  }
 0x118   : > { %v556_v11 = vadd.f32 %v555_v8, %v554_v6  ;;  %v2000_v6 = vld [vmem:[%s2676_s5 + $0xd8] sm:$0xff] (!%p1682_p1)  }
 0x119   : > { %v2002_v8 = vld [vmem:[%s2676_s5 + $0x98] sm:$0xff] (!%p1682_p1)  }
 0x11a   : > { %v558_v15 = vadd.f32 %v557_v12, %v556_v11  ;;  %v613_v11 = vsub.s32 (!%p1682_p1), 0, %v612_v10  ;;  %v621_v12 = vsub.s32 (!%p1682_p1), 2, %v612_v10 }
 0x11c   : > { %v560_v20 = vadd.f32 %v559_v16, %v558_v15  ;;  %v617_v15 = vsub.s32 (!%p1682_p1), 1, %v612_v10  ;;  %v625_v16 = vsub.s32 (!%p1682_p1), 3, %v612_v10  ;;  %v622_v18 = vrot.slane (!%p1682_p1), %v589_v14, %v621_v12  ;;  %v2004_v12 = vld [vmem:[%s2676_s5 + $0xe0] sm:$0xff] (!%p1682_p1)  }
 0x11e   : > { %v562_v22 = vadd.f32 %v561_v17, %v560_v20  ;;  %v614_v17 = vrot.slane (!%p1682_p1), %v589_v14, %v613_v11  ;;  %v618_v19 = vrot.slane (!%p1682_p1), %v589_v14, %v617_v15  ;;  %v626_v20 = vrot.slane (!%p1682_p1), %v589_v14, %v625_v16  ;;  %v2003_v11 = vld [vmem:[%s2676_s5 + $0x60] sm:$0xff] (!%p1682_p1)   ;;  %v2007_v16 = vld [vmem:[%s2676_s5 + $0x68] sm:$0xff] (!%p1682_p1)  }
 0x11f   : > { %v2006_v15 = vld [vmem:[%s2676_s5 + $0xa0] sm:$0xff] (!%p1682_p1)  }
 0x120   : > { %v564_v25 = vadd.f32 %v563_v24, %v562_v22 }
 0x122   : > { %v566_v27 = vadd.f32 %v565_v26, %v564_v25 }
 0x124   : > { %v568_v29 = vadd.f32 %v567_v28, %v566_v27  ;;  %v629_v27 = vsub.s32 (!%p1682_p1), 4, %v612_v10  ;;  %v637_v28 = vsub.s32 (!%p1682_p1), 6, %v612_v10 }
 0x126   : > { %v569_v30 = vrot.slane %v568_v29, 4  ;;  %v630_v41 = vrot.slane (!%p1682_p1), %v589_v14, %v629_v27  ;;  %v638_v42 = vrot.slane (!%p1682_p1), %v589_v14, %v637_v28  ;;  %v2016_v27 = vld [vmem:[%s2676_s5 + $0xf8] sm:$0xff] (!%p1682_p1)  }
 0x127   : > { %v2017_v28 = vld [vmem:[%s2676_s5 + $0x38] sm:$0xff] (!%p1682_p1)  }
 0x128   : > { %v570_v31 = vadd.f32 %v569_v30, %v568_v29 }
 0x12a   : > { %v571_v32 = vrot.slane %v570_v31, 2 }
 0x12c   : > { %v572_v33 = vadd.f32 %v571_v32, %v570_v31 }
 0x12e   : > { %v573_v34 = vrot.slane %v572_v33, 1  ;;  %581 = sbr.rel (%p1682_p1) target bundleno = 1125 (0x465), region = 56 }
 0x130   : > { %v574_v35 = vadd.f32 %v573_v34, %v572_v33  ;;  %v633_v33 = vsub.s32 (!%p1682_p1), 5, %v612_v10 }
 0x132   : > { %v575_v36 = vadd.f32 %v574_v35, %v536_v13  ;;  %v634_v45 = vrot.slane (!%p1682_p1), %v589_v14, %v633_v33  ;;  %v2020_v33 = vld [vmem:[%s2676_s5 + $0x1c0] sm:$0xff] (!%p1682_p1)  }
 0x134   : > { %577 = vst.msk [vmem:[#allocation2] sm:$0x1] %vm576_vm4, %v575_v36 }
 0x13b   : > { %v582_v39 = vld [vmem:[#allocation2] sm:$0x1] }
 0x13c   : > { %v583_v47 = vmul.f32 0.00390625, %v582_v39 }
 0x13e   : > { %v584_v54 = vpack.c.bf16 %v583_v47, %v583_v47  ;;  %v642_v47 = vrot.slane %v589_v14, %v641_v37  ;;  %v2005_v14 = vld [vmem:[%s2676_s5 + $0x20] sm:$0xff]  }
 0x140   : > { %1692 = vmatmul.mubr.msk.bf16.vlgmr.msra.gmra.mrb[0].mxu0 %vm537_vm3, %v584_v54  ;;  %1694 = vmatmul.mubr.msk.bf16.vlgmr.msra.gmra.mrb[0].mxu1 %vm537_vm3, %v584_v54 }
 0x141   : > { %762 = vmatpush1.bf16.msra.mxu0 %v668_v55  ;;  %803 = vmatpush1.bf16.msra.mxu1 %v674_v56 }
 0x142   : > { %793 = vmatprep.mubr.bf16.mxu0 %v2152_v43  ;;  %834 = vmatprep.mubr.bf16.mxu1 %v2152_v43 }
 0x143   : > { %1777 = vmatprep.subr.bf16.mxu0 %v1987_v57  ;;  %1799 = vmatprep.subr.bf16.mxu1 %v1988_v58 }
 0x148   : > { %1696 = vmatmul.mubr.msk.bf16.vlgmr.msra.gmra.mrb[4].mxu0 %vm537_vm3, %v584_v54  ;;  %1698 = vmatmul.mubr.msk.bf16.vlgmr.msra.gmra.mrb[4].mxu1 %vm537_vm3, %v584_v54 }
 0x149   : > { %1778 = vmatpush3.bf16.msra.mxu0 %v1989_v59  ;;  %1800 = vmatpush3.bf16.msra.mxu1 %v1990_v60 }
 0x14a   : > { %1779 = vmatprep.subr.bf16.mxu0 %v1991_v61  ;;  %1801 = vmatprep.subr.bf16.mxu1 %v1992_v62 }
 0x14d   : > { %1780 = vmatpush3.bf16.msra.mxu0 %v1993_v63  ;;  %1802 = vmatpush3.bf16.msra.mxu1 %v1994_v0 }
 0x14e   : > { %1781 = vmatprep.subr.bf16.mxu0 %v1995_v1  ;;  %1803 = vmatprep.subr.bf16.mxu1 %v1996_v2 }
 0x151   : > { %1782 = vmatpush3.bf16.msra.mxu0 %v1997_v3  ;;  %1804 = vmatpush3.bf16.msra.mxu1 %v1998_v4 }
 0x152   : > { %1783 = vmatprep.subr.bf16.mxu0 %v1999_v5  ;;  %1805 = vmatprep.subr.bf16.mxu1 %v2000_v6 }
 0x155   : > { %1784 = vmatpush3.bf16.msra.mxu0 %v2001_v7  ;;  %1806 = vmatpush3.bf16.msra.mxu1 %v2002_v8 }
 0x156   : > { %1785 = vmatprep.subr.bf16.mxu0 %v2003_v11  ;;  %1807 = vmatprep.subr.bf16.mxu1 %v2004_v12  ;;  %v2050_v11 = vld [vmem:[%s2676_s5 + $0x1b8] sm:$0xff]  }
 0x159   : > { %1786 = vmatpush3.bf16.msra.mxu0 %v2005_v14  ;;  %1808 = vmatpush3.bf16.msra.mxu1 %v2006_v15 }
 0x15a   : > { %1787 = vmatprep.subr.bf16.mxu0 %v2007_v16 }
 0x213   : > { %v713_v21 = vpop.f32.mrb[0].mxu0  ;;  %v754_v22 = vpop.f32.mrb[0].mxu1 }
 0x214   : > { %v2415_v23 = vadd.f32 %v713_v21, %v614_v17  ;;  %v715_v24 = vpop.f32.mrb[1].mxu0  ;;  %v2417_v25 = vadd.f32 %v754_v22, %v622_v18  ;;  %v756_v26 = vpop.f32.mrb[1].mxu1  ;;  %v2008_v17 = vld [vmem:[%s2676_s5 + $0xe8] sm:$0xff]   ;;  %v2012_v21 = vld [vmem:[%s2676_s5 + $0xf0] sm:$0xff]  }
 0x215   : > { %v2419_v29 = vadd.f32 %v715_v24, %v618_v19  ;;  %v717_v30 = vpop.f32.mrb[2].mxu0  ;;  %v2421_v31 = vadd.f32 %v756_v26, %v626_v20  ;;  %v758_v32 = vpop.f32.mrb[2].mxu1  ;;  %v2009_v18 = vld [vmem:[%s2676_s5 + $0x28] sm:$0xff]   ;;  %v2011_v20 = vld [vmem:[%s2676_s5 + $0x70] sm:$0xff]   ;;  %1809 = vmatprep.subr.bf16.mxu1 %v2008_v17  ;;  %v2015_v26 = vld [vmem:[%s2676_s5 + $0x78] sm:$0xff]  }
 0x216   : > { %v843_v34 = vmul.f32 %v2415_v23, %v2415_v23  ;;  %v845_v13 = vmul.f32 %v2417_v25, %v2417_v25  ;;  %v718_v35 = vpop.f32.mrb[3].mxu0  ;;  %v759_v36 = vpop.f32.mrb[3].mxu1  ;;  %v2010_v19 = vld [vmem:[%s2676_s5 + $0xa8] sm:$0xff]   ;;  %1788 = vmatpush3.bf16.msra.mxu0 %v2009_v18  ;;  %v2013_v22 = vld [vmem:[%s2676_s5 + $0x30] sm:$0xff]   ;;  %v2018_v30 = vld [vmem:[%s2676_s5 + $0xb8] sm:$0xff]  }
 0x217   : > { %v844_v38 = vmul.f32 %v2419_v29, %v2419_v29  ;;  %v846_v39 = vmul.f32 %v2421_v31, %v2421_v31  ;;  %1810 = vmatpush3.bf16.msra.mxu1 %v2010_v19  ;;  %v2014_v24 = vld [vmem:[%s2676_s5 + $0xb0] sm:$0xff]   ;;  %1789 = vmatprep.subr.bf16.mxu0 %v2011_v20  ;;  %v2019_v32 = vld [vmem:[%s2676_s5 + $0x140] sm:$0xff]  }
 0x218   : > { %v852_v40 = vsel %vm851_vm6, %v843_v34, 0.0  ;;  %v855_v44 = vsel %vm851_vm6, %v845_v13, 0.0  ;;  %1811 = vmatprep.subr.bf16.mxu1 %v2012_v21  ;;  %v1015_v19 = vld [vmem:[%s2677_s6] sm:$0x1] }
 0x219   : > { %v853_v43 = vsel %vm851_vm6, %v844_v38, 0.0  ;;  %v857_v48 = vsel %vm851_vm6, %v846_v39, 0.0 }
 0x21a   : > { %v854_v46 = vadd.f32 %v853_v43, %v852_v40  ;;  %1790 = vmatpush3.bf16.msra.mxu0 %v2013_v22 }
 0x21b   : > { %v795_v49 = vpop.f32.mrb[4].mxu0  ;;  %v836_v50 = vpop.f32.mrb[4].mxu1  ;;  %1812 = vmatpush3.bf16.msra.mxu1 %v2014_v24  ;;  %1791 = vmatprep.subr.bf16.mxu0 %v2015_v26 }
 0x21c   : > { %v856_v51 = vadd.f32 %v855_v44, %v854_v46  ;;  %v2435_v52 = vadd.f32 %v795_v49, %v630_v41  ;;  %v797_v53 = vpop.f32.mrb[5].mxu0  ;;  %v2437_v54 = vadd.f32 %v836_v50, %v638_v42  ;;  %v838_v55 = vpop.f32.mrb[5].mxu1  ;;  %1813 = vmatprep.subr.bf16.mxu1 %v2016_v27  ;;  %v2026_v49 = vld [vmem:[%s2676_s5 + $0x188] sm:$0xff]   ;;  %v2027_v50 = vld [vmem:[%s2676_s5 + $0x150] sm:$0xff]  }
 0x21d   : > { %v2439_v56 = vadd.f32 %v797_v53, %v634_v45  ;;  %v799_v57 = vpop.f32.mrb[6].mxu0  ;;  %v840_v58 = vpop.f32.mrb[6].mxu1  ;;  %v839_v63 = vadd.f32 %v838_v55, %v642_v47  ;;  %v2029_v53 = vld [vmem:[%s2676_s5 + $0x110] sm:$0xff]  }
 0x21e   : > { %v858_v59 = vadd.f32 %v857_v48, %v856_v51  ;;  %v847_v60 = vmul.f32 %v2435_v52, %v2435_v52  ;;  %v849_v61 = vmul.f32 %v2437_v54, %v2437_v54  ;;  %v800_v62 = vpop.f32.mrb[7].mxu0  ;;  %v841_v0 = vpop.f32.mrb[7].mxu1  ;;  %1792 = vmatpush3.bf16.msra.mxu0 %v2017_v28  ;;  %v2025_v48 = vld [vmem:[%s2676_s5 + $0x108] sm:$0xff]   ;;  %v2028_v51 = vld [vmem:[%s2676_s5 + $0x1d0] sm:$0xff]   ;;  %v2032_v57 = vld [vmem:[%s2676_s5 + $0x1d8] sm:$0xff]  }
 0x21f   : > { %v848_v1 = vmul.f32 %v2439_v56, %v2439_v56  ;;  %v850_v5 = vmul.f32 %v839_v63, %v839_v63  ;;  %1814 = vmatpush3.bf16.msra.mxu1 %v2018_v30  ;;  %1821 = vmatprep.subr.bf16.mxu0 %v2019_v32  ;;  %v2030_v55 = vld [vmem:[%s2676_s5 + $0x190] sm:$0xff]   ;;  %v2033_v58 = vld [vmem:[%s2676_s5 + $0x118] sm:$0xff]   ;;  %v2037_v62 = vld [vmem:[%s2676_s5 + $0x120] sm:$0xff]  }
 0x220   : > { %v859_v2 = vsel %vm851_vm6, %v847_v60, 0.0  ;;  %v863_v6 = vsel %vm851_vm6, %v849_v61, 0.0  ;;  %1843 = vmatprep.subr.bf16.mxu1 %v2020_v33  ;;  %v2035_v60 = vld [vmem:[%s2676_s5 + $0x160] sm:$0xff]   ;;  %v2039_v0 = vld [vmem:[%s2676_s5 + $0x168] sm:$0xff]  }
 0x221   : > { %v860_v3 = vadd.f32 %v859_v2, %v858_v59  ;;  %v861_v4 = vsel %vm851_vm6, %v848_v1, 0.0  ;;  %v865_v9 = vsel %vm851_vm6, %v850_v5, 0.0  ;;  %v2034_v59 = vld [vmem:[%s2676_s5 + $0x198] sm:$0xff]   ;;  %v2036_v61 = vld [vmem:[%s2676_s5 + $0x1e0] sm:$0xff]   ;;  %v2040_v1 = vld [vmem:[%s2676_s5 + $0x1e8] sm:$0xff]  }
 0x222   : > { %v2041_v2 = vld [vmem:[%s2676_s5 + $0x128] sm:$0xff]   ;;  %v2044_v5 = vld [vmem:[%s2676_s5 + $0x1f0] sm:$0xff]  }
 0x223   : > { %v862_v7 = vadd.f32 %v861_v4, %v860_v3  ;;  %v2042_v3 = vld [vmem:[%s2676_s5 + $0x1a8] sm:$0xff]   ;;  %v2043_v4 = vld [vmem:[%s2676_s5 + $0x170] sm:$0xff]  }
 0x225   : > { %v864_v8 = vadd.f32 %v863_v6, %v862_v7  ;;  %v2045_v6 = vld [vmem:[%s2676_s5 + $0x130] sm:$0xff]  }
 0x226   : > { %v2046_v7 = vld [vmem:[%s2676_s5 + $0x1b0] sm:$0xff]  }
 0x227   : > { %v866_v10 = vadd.f32 %v865_v9, %v864_v8  ;;  %v2047_v8 = vld [vmem:[%s2676_s5 + $0x178] sm:$0xff]  }
 0x228   : > { %v2048_v9 = vld [vmem:[%s2676_s5 + $0x1f8] sm:$0xff]  }
 0x229   : > { %867 = vadd.xlane.f32.xlu0 %v866_v10  ;;  %v2049_v10 = vld [vmem:[%s2676_s5 + $0x138] sm:$0xff]  }
 0x2b6   : > { %v868_v34 = vpop.xlane.xlu0 %867 }
 0x2b7   : > { %v869_v13 = vmax.f32 %v868_v34, 1e-24 }
 0x2b9   : > { %2051 = vrsqrt.f32 %v869_v13 }
 0x2c3   : > { %v2505_v35 = vpop.eup %2051 }
 0x2c4   : > { %v872_v36 = vmul.f32 %v2505_v35, %v2419_v29  ;;  %v874_v37 = vmul.f32 %v2505_v35, %v2421_v31  ;;  %v871_v38 = vmul.f32 %v2505_v35, %v2415_v23  ;;  %v873_v39 = vmul.f32 %v2505_v35, %v2417_v25  ;;  %v2021_v29 = vld [vmem:[%s2676_s5 + $0x100] sm:$0xff]   ;;  %v2023_v25 = vld [vmem:[%s2676_s5 + $0x148] sm:$0xff]  }
 0x2c5   : > { %v876_v40 = vmul.f32 %v2505_v35, %v2439_v56  ;;  %v878_v41 = vmul.f32 %v2505_v35, %v839_v63  ;;  %v2022_v23 = vld [vmem:[%s2676_s5 + $0x180] sm:$0xff]   ;;  %v2024_v31 = vld [vmem:[%s2676_s5 + $0x1c8] sm:$0xff]   ;;  %v2031_v56 = vld [vmem:[%s2676_s5 + $0x158] sm:$0xff]   ;;  %v875_v12 = vmul.f32 %v2505_v35, %v2435_v52  ;;  %v877_v14 = vmul.f32 %v2505_v35, %v2437_v54 }
 0x2c6   : > { %v880_v42 = vpack.c.bf16 %v872_v36, %v872_v36  ;;  %v882_v43 = vpack.c.bf16 %v874_v37, %v874_v37  ;;  %v879_v44 = vpack.c.bf16 %v871_v38, %v871_v38  ;;  %v881_v45 = vpack.c.bf16 %v873_v39, %v873_v39  ;;  %v2038_v63 = vld [vmem:[%s2676_s5 + $0x1a0] sm:$0xff]  }
 0x2c7   : > { %v884_v46 = vpack.c.bf16 %v876_v40, %v876_v40  ;;  %v886_v47 = vpack.c.bf16 %v878_v41, %v878_v41  ;;  %v883_v15 = vpack.c.bf16 %v875_v12, %v875_v12  ;;  %v885_v16 = vpack.c.bf16 %v877_v14, %v877_v14 }
 0x2c8   : > { %1432 = vmatprep.mubr.bf16.mxu0 %v880_v42  ;;  %1472 = vmatprep.mubr.bf16.mxu1 %v882_v43 }
 0x2c9   : > { %1433 = vmatmul.mubr.bf16.vlgmr.msra.gmra.mrb[8].mxu0 %v879_v44  ;;  %1473 = vmatmul.mubr.bf16.vlgmr.msra.gmra.mrb[8].mxu1 %v881_v45 }
 0x2ca   : > { %1822 = vmatpush3.bf16.msra.mxu0 %v2021_v29  ;;  %1844 = vmatpush3.bf16.msra.mxu1 %v2022_v23 }
 0x2cb   : > { %1512 = vmatprep.mubr.bf16.mxu0 %v884_v46  ;;  %1552 = vmatprep.mubr.bf16.mxu1 %v886_v47 }
 0x2cc   : > { %1823 = vmatprep.subr.bf16.mxu0 %v2023_v25  ;;  %1845 = vmatprep.subr.bf16.mxu1 %v2024_v31 }
 0x2ce   : > { %1824 = vmatpush3.bf16.msra.mxu0 %v2025_v48  ;;  %1846 = vmatpush3.bf16.msra.mxu1 %v2026_v49 }
 0x2cf   : > { %1825 = vmatprep.subr.bf16.mxu0 %v2027_v50  ;;  %1847 = vmatprep.subr.bf16.mxu1 %v2028_v51 }
 0x2d2   : > { %1826 = vmatpush3.bf16.msra.mxu0 %v2029_v53  ;;  %1848 = vmatpush3.bf16.msra.mxu1 %v2030_v55 }
 0x2d3   : > { %1827 = vmatprep.subr.bf16.mxu0 %v2031_v56  ;;  %1849 = vmatprep.subr.bf16.mxu1 %v2032_v57 }
 0x2d6   : > { %1828 = vmatpush3.bf16.msra.mxu0 %v2033_v58  ;;  %1850 = vmatpush3.bf16.msra.mxu1 %v2034_v59 }
 0x2d7   : > { %1829 = vmatprep.subr.bf16.mxu0 %v2035_v60  ;;  %1851 = vmatprep.subr.bf16.mxu1 %v2036_v61 }
 0x2da   : > { %1830 = vmatpush3.bf16.msra.mxu0 %v2037_v62  ;;  %1852 = vmatpush3.bf16.msra.mxu1 %v2038_v63 }
 0x2db   : > { %1831 = vmatprep.subr.bf16.mxu0 %v2039_v0  ;;  %1853 = vmatprep.subr.bf16.mxu1 %v2040_v1 }
 0x2de   : > { %1832 = vmatpush3.bf16.msra.mxu0 %v2041_v2  ;;  %1854 = vmatpush3.bf16.msra.mxu1 %v2042_v3 }
 0x2df   : > { %1833 = vmatprep.subr.bf16.mxu0 %v2043_v4  ;;  %1855 = vmatprep.subr.bf16.mxu1 %v2044_v5 }
 0x2e2   : > { %1834 = vmatpush3.bf16.msra.mxu0 %v2045_v6  ;;  %1856 = vmatpush3.bf16.msra.mxu1 %v2046_v7 }
 0x2e3   : > { %1835 = vmatprep.subr.bf16.mxu0 %v2047_v8  ;;  %1857 = vmatprep.subr.bf16.mxu1 %v2048_v9 }
 0x2e6   : > { %1836 = vmatpush3.bf16.msra.mxu0 %v2049_v10  ;;  %1858 = vmatpush3.bf16.msra.mxu1 %v2050_v11 }
 0x2e9   : > { %1513 = vmatmul.mubr.bf16.vlgmr.msra.gmra.mrb[12].mxu0 %v883_v15  ;;  %1553 = vmatmul.mubr.bf16.vlgmr.msra.gmra.mrb[12].mxu1 %v885_v16 }
 0x39c   : > { %v1793_v17 = vpop.f32.mrb[8].mxu0  ;;  %v1815_v18 = vpop.f32.mrb[8].mxu1 }
 0x39d   : > { %v1794_v20 = vpop.f32.mrb[9].mxu0  ;;  %v1816_v21 = vpop.f32.mrb[9].mxu1 }
 0x39e   : > { %v1795_v22 = vadd.f32 %v1794_v20, %v1793_v17  ;;  %v1817_v24 = vadd.f32 %v1816_v21, %v1815_v18  ;;  %v1796_v52 = vpop.f32.mrb[10].mxu0  ;;  %v1818_v26 = vpop.f32.mrb[10].mxu1 }
 0x39f   : > { %v1797_v27 = vpop.f32.mrb[11].mxu0  ;;  %v1819_v54 = vpop.f32.mrb[11].mxu1 }
 0x3a0   : > { %v1435_v28 = vadd.f32 %v1795_v22, %v1015_v19 }
 0x3a2   : > { %v1475_v30 = vadd.f32 %v1817_v24, %v1435_v28 }
 0x3bc   : > { %v1837_v32 = vpop.f32.mrb[12].mxu0  ;;  %v1859_v33 = vpop.f32.mrb[12].mxu1 }
 0x3bd   : > { %v1838_v34 = vpop.f32.mrb[13].mxu0  ;;  %v1860_v13 = vpop.f32.mrb[13].mxu1 }
 0x3be   : > { %v1839_v35 = vadd.f32 %v1838_v34, %v1837_v32  ;;  %v1861_v36 = vadd.f32 %v1860_v13, %v1859_v33  ;;  %v1840_v37 = vpop.f32.mrb[14].mxu0  ;;  %v1862_v38 = vpop.f32.mrb[14].mxu1 }
 0x3bf   : > { %v1841_v39 = vpop.f32.mrb[15].mxu0  ;;  %v1863_v40 = vpop.f32.mrb[15].mxu1 }
 0x3c0   : > { %v1515_v41 = vadd.f32 %v1839_v35, %v1475_v30 }
 0x3c2   : > { %v1555_v42 = vadd.f32 %v1861_v36, %v1515_v41 }
 0x3c4   : > { %v1560_v43 = vmul.f32 %v1555_v42, %v1555_v42 }
 0x3c6   : > { %v1561_v44 = vsel %vm851_vm6, %v1560_v43, 0.0 }
 0x3c7   : > { %1562 = vadd.xlane.f32.xlu0 %v1561_v44 }
 0x454   : > { %v1563_v45 = vpop.xlane.xlu0 %1562 }
 0x455   : > { %v1564_v29 = vmax.f32 %v1563_v45, 1e-24 }
 0x457   : > { %2053 = vrsqrt.f32 %v1564_v29 }
 0x461   : > { %v2054_v23 = vpop.eup %2053 }
 0x462   : > { %v1566_v25 = vmul.f32 %v2054_v23, %v1555_v42 }
 0x464   : > { %1567 = vst [vmem:[%s2274_s16] sm:$0x1] %v1566_v25 }
 0x465 PF: > { %s1763_s22 = sshll.u32 %s2137_s28, 4  ;;  %s1581_s9 = sshll.u32 %s2274_s16, 4  ;;  %s1582_s9 = int_to_ptr.vmem [resolvable:$true] %s1581_s9 }
 0x466   : > { %s2621_s23 = scalar_lea.hbm %s2678_s7, %s1763_s22  ;;  %s2685_s10 = sand.u32 1, %s2125_s25  }
 0x467   : > { %s1569_s18 = scalar_lea.sflag [#allocation4], %s2685_s10  ;;  %s2055_s15 = scalar_lea.vmem %s1582_s9, 16 }
 0x468   : > { %p2056_p2 = scmp.ne.s32.totalorder %s1582_s9, %s2055_s15  ;;  %s2153_s19 = smov [#allocation3]  }
 0x469   : > { %s2059_s20 = sshll.u32 %s2153_s19, 4  ;;  %s2060_s20 = int_to_ptr.vmem [resolvable:$false] %s2059_s20 }
 0x46a   : > { %p2057_p4 = pnand %p2056_p2, %p2243_p3  ;;  %s2061_s27 = scalar_lea.vmem %s2060_s20, 32 }
 0x46b   : > { %p2062_p6 = scmp.lt.s32.totalorder %s1582_s9, %s2060_s20  ;;  %p2063_p7 = scmp.lt.s32.totalorder %s2061_s27, %s2055_s15 }
 0x46c   : > { %p2058_p5 = pneg %p2057_p4 }
 0x46d   : > { %p2064_p8 = por %p2063_p7, %p2062_p6 }
 0x46f   : > { %p2065_p10 = pnand %p2064_p8, %p2058_p5 }
 0x471   : > { %2068 = shalt.err (!%p2065_p10)
}
 0x472   : > { %s2069_s28 = scalar_lea.hbm %s2621_s23, 16  ;;  %s2073_s22 = scalar_lea.hbm %s2678_s7, 32 }
 0x473   : > { %p2070_p11 = scmp.ne.s32.totalorder %s2621_s23, %s2069_s28  ;;  %p2074_p0 = scmp.lt.u32.totalorder %s2621_s23, %s2678_s7 }
 0x474   : > { %p2075_p1 = scmp.lt.u32.totalorder %s2073_s22, %s2069_s28  ;;  %p2077_p4 = scmp.lt.u32.totalorder %s2069_s28, %s2621_s23 }
 0x475   : > { %p2071_p12 = pnand %p2070_p11, %p2243_p3 }
 0x476   : > { %p2076_p2 = por %p2075_p1, %p2074_p0 }
 0x477   : > { %p2072_p13 = pneg %p2071_p12 }
 0x478   : > { %p2078_p5 = por %p2077_p4, %p2076_p2 }
 0x47a   : > { %p2079_p6 = pnand %p2078_p5, %p2072_p13 }
 0x47c   : > { %2082 = shalt.err (!%p2079_p6)
}
 0x47d   : > { %1895 = dma.vmem_to_hbm [thread:$0]  (%p2243_p3), %s1582_s9, 16, %s2621_s23, %s1569_s18  }
 0x47e PF: > { %p1901_p7 = scmp.ge.s32.totalorder %s2149_s8, 2  ;;  %s1593_s10 = sand.u32 1, %s2121_s24  }
 0x47f   : > { %s1594_s15 = scalar_lea.sflag [#allocation4], %s1593_s10 }
 0x480   : > { %p1898_p8 = pnand %p1901_p7, %p2253_p9 }
 0x482   : > { %2116 = dma.done.wait (!%p1898_p8), %s1594_s15, 16  }
 0x483   : > { %2118 = vsyncadd (!%p1898_p8), %s1594_s15, 4294967280  ;;  %s20_s8 = sadd.s32 1, %s2149_s8   ;;  %s2686_s13 = sld [smem:[#allocation6_spill]] }
 0x484   : > { %p17_p10 = scmp.ge.s32.totalorder %s20_s8, 6   ;;  %s2687_s23 = sld [smem:[#allocation7_spill]] }
 0x485   : > { %s2688_s24 = smov %s2125_s25  ;;  %s2689_s25 = smov %s2129_s26 }
 0x486   : > { %s2690_s26 = smov %s2261_s17  ;;  %s2691_s27 = smov %s2141_s29 }
 0x487   : > { %s2692_s28 = smov %s2145_s30  ;;  %19 = sbr.rel (!%p17_p10) target bundleno = 5 (0x5), region = 91 }
 0x489   : > { %s2693_s29 = smov %s2686_s13 }
 0x48a   : > { %s2694_s30 = smov %s2687_s23 }
 0x48e   :  { %1598 = vsyncpa [#allocation4], 1 }
 0x48f   :  { %1600 = vsyncpa [#allocation4 + $0x1], 1 }

</bundles_post_ra>
